<compile_context>
chip_gen: v5e
topology: v5e:2x2
jax: 0.10.0
libtpu: 0.0.40
codegen_flags: <defaults>
</compile_context>

<pallas_src>
import jax
import jax.numpy as jnp
from jax.experimental import pallas as pl
from jax.experimental.pallas import tpu as pltpu

LANE = 128


def _round_up(x, m):
    return ((x + m - 1) // m) * m


def _tile_bytes_and_vmem_limit():
    """Per-input block bytes and scoped-VMEM limit, per TPU generation."""
    tile = 2 * 1024 * 1024          # v5e/v6e: ~2 MiB/input is already ~85-90% of roofline
    limit = 40 * 1024 * 1024
    try:
        info = pltpu.get_tpu_info()
        vmem = getattr(info, "vmem_capacity_bytes", None)
        if vmem is not None and vmem <= 64 * 1024 * 1024:
            # v7x-class: 64 MiB VMEM/TC but ~3.2 TB/s HBM -> bigger blocks to
            # amortize the fixed per-grid-step cost.
            tile = 4 * 1024 * 1024
            limit = 48 * 1024 * 1024
    except Exception:
        pass
    return tile, limit


def _make_kernel(total, blk_rows, num_k):
    """total: true element count; blk_rows: TR; num_k: grid extent along k."""
    block_elems = blk_rows * LANE

    def kernel(y_ref, yp_ref, out_ref):
        p = pl.program_id(0)
        k = pl.program_id(1)

        # The (8, 128) output block is resident across the k (reduction) axis
        # and doubles as the accumulator.
        @pl.when(k == 0)
        def _():
            out_ref[...] = jnp.zeros_like(out_ref)

        y = y_ref[...].astype(jnp.float32)
        yp = yp_ref[...].astype(jnp.float32)
        ey = y - yp
        # 2*ey*sigmoid(ey) - ey == ey * tanh(ey/2): cheaper and overflow-free.
        val = ey * jnp.tanh(0.5 * ey)

        # Elements still valid from this block's start (int32: totals < 2^31).
        rem = jnp.int32(total) - (p * num_k + k) * jnp.int32(block_elems)

        def fold(v):
            # (TR,128) -> (8,128): pure vreg-wise VALU adds, no cross-lane work.
            return jnp.sum(v.reshape(blk_rows // 8, 8, LANE), axis=0)

        @pl.when(rem >= block_elems)
        def _():                       # fully interior block: mask-free
            out_ref[...] += fold(val)

        @pl.when(rem < block_elems)
        def _():                       # boundary / overhang block: mask tail
            lidx = (jax.lax.broadcasted_iota(jnp.int32, (blk_rows, LANE), 0) * LANE
                    + jax.lax.broadcasted_iota(jnp.int32, (blk_rows, LANE), 1))
            out_ref[...] += fold(jnp.where(lidx < rem, val, 0.0))

    return kernel


def xsigmoid_loss(y_t, y_prime_t):
    """Pallas implementation of XSigmoidLoss.forward."""
    assert y_t.shape == y_prime_t.shape, (y_t.shape, y_prime_t.shape)
    assert y_t.dtype == y_prime_t.dtype, (y_t.dtype, y_prime_t.dtype)
    total = int(y_t.size)
    if total == 0:
        return jnp.float32(float("nan"))     # torch.mean of empty is nan
    itemsize = jnp.dtype(y_t.dtype).itemsize

    tile_bytes, vmem_limit = _tile_bytes_and_vmem_limit()
    tr_target = max(8, tile_bytes // (LANE * itemsize))   # multiple of 8

    rows_arr = -(-total // LANE)                 # rows of the (rows, 128) view
    lane_pad = rows_arr * LANE - total           # < 128; only when total % 128 != 0

    # Megacore split: two row-groups whenever there are >= two 8-row chunks.
    P = 2 if rows_arr >= 16 else 1
    rows_per_core = -(-rows_arr // P)
    TR = max(8, min(tr_target, _round_up(rows_per_core, 8)))
    K = -(-rows_per_core // TR)                  # blocks per row-group
    nblocks = -(-rows_arr // TR)                 # real (non-overhang) blocks

    def _prep(a):
        flat = a.reshape(-1)                     # bitcast for contiguous arrays
        if lane_pad:
            # Only when total % 128 != 0: a < 128-element pad so the 2-D view
            # exists; the padded tail is masked in-kernel anyway.
            flat = jnp.pad(flat, (0, lane_pad))
        return flat.reshape(rows_arr, LANE)

    x = _prep(y_t)
    t = _prep(y_prime_t)

    # Clamp the block index so overhang grid steps (when P*K > nblocks) re-read
    # the last real block instead of going OOB; their contribution is masked to 0.
    in_map = lambda p, k: (jnp.minimum(p * K + k, nblocks - 1), 0)

    partials = pl.pallas_call(
        _make_kernel(total, TR, K),
        out_shape=jax.ShapeDtypeStruct((P * 8, LANE), jnp.float32),
        grid_spec=pltpu.PrefetchScalarGridSpec(
            num_scalar_prefetch=0,
            grid=(P, K),
            in_specs=[
                pl.BlockSpec((TR, LANE), in_map),
                pl.BlockSpec((TR, LANE), in_map),
            ],
            out_specs=pl.BlockSpec((8, LANE), lambda p, k: (p, 0)),
        ),
        compiler_params=pltpu.CompilerParams(
            dimension_semantics=("parallel", "arbitrary"),
            vmem_limit_bytes=vmem_limit,
        ),
        cost_estimate=pl.CostEstimate(
            flops=6 * total,
            transcendentals=total,
            bytes_accessed=2 * total * itemsize + P * 8 * LANE * 4,
        ),
    )(x, t)

    return jnp.sum(partials) / jnp.float32(total)


def _reference(y_t, y_prime_t):
    ey = y_t - y_prime_t
    return jnp.mean(2.0 * ey / (1.0 + jnp.exp(-ey)) - ey)


if __name__ == "__main__":
    key = jax.random.PRNGKey(0)
    k1, k2, k3, k4 = jax.random.split(key, 4)

    # batch=2, channels=4, spatial=16x16 (divides the lane width -> no copy).
    shape = (2, 4, 16, 16)
    y_t = jax.random.normal(k1, shape, dtype=jnp.float32)
    y_prime_t = jax.random.normal(k2, shape, dtype=jnp.float32)

    loss = xsigmoid_loss(y_t, y_prime_t)
    jax.block_until_ready(loss)
    ref = _reference(y_t, y_prime_t)
    assert jnp.allclose(loss, ref, rtol=1e-5, atol=1e-6), (loss, ref)

    # Second small case exercising the in-kernel tail mask (rows not a
    # multiple of the block rows, no wrapper-side padding).
    shape2 = (2, 4, 16, 17)
    a = jax.random.normal(k3, shape2, dtype=jnp.float32)
    b = jax.random.normal(k4, shape2, dtype=jnp.float32)
    loss2 = xsigmoid_loss(a, b)
    jax.block_until_ready(loss2)
    ref2 = _reference(a, b)
    assert jnp.allclose(loss2, ref2, rtol=1e-5, atol=1e-6), (loss2, ref2)

    print("KERNEL_OK")
</pallas_src>

<mosaic_0001>
module attributes {stable_mosaic.version = 11 : i64} {
  func.func @kernel(%arg0: i32, %arg1: i32, %arg2: memref<8x128xf32, #tpu.memory_space<vmem>>, %arg3: memref<8x128xf32, #tpu.memory_space<vmem>>, %arg4: memref<8x128xf32, #tpu.memory_space<vmem>>) attributes {dimension_semantics = [#tpu.dimension_semantics<parallel>, #tpu.dimension_semantics<arbitrary>], iteration_bounds = array<i64: 2, 1>, scalar_prefetch = 0 : i64, scratch_operands = 0 : i64, tpu.core_type = #tpu.core_type<tc>, window_params = [{transform_indices = @transform_0, window_bounds = array<i64: 8, 128>}, {transform_indices = @transform_1, window_bounds = array<i64: 8, 128>}, {transform_indices = @transform_2, window_bounds = array<i64: 8, 128>}]} {
    %c0_i32 = arith.constant 0 : i32
    %0 = arith.cmpi eq, %arg1, %c0_i32 : i32
    %1 = arith.extui %0 : i1 to i32
    %c0_i32_0 = arith.constant 0 : i32
    %2 = arith.cmpi ne, %1, %c0_i32_0 : i32
    scf.if %2 {
      %cst_8 = arith.constant 0.000000e+00 : f32
      %20 = vector.broadcast %cst_8 : f32 to vector<8x128xf32>
      %c0_9 = arith.constant 0 : index
      %c0_10 = arith.constant 0 : index
      %21 = vector.load %arg4[%c0_9, %c0_10] : memref<8x128xf32, #tpu.memory_space<vmem>>, vector<8x128xf32>
      tpu.vector_store %arg4[%c0_9, %c0_10], %20 {strides = array<i32>} : memref<8x128xf32, #tpu.memory_space<vmem>>, vector<8x128xf32>,
    } else {
    }
    %c0 = arith.constant 0 : index
    %c0_1 = arith.constant 0 : index
    %3 = vector.load %arg2[%c0, %c0_1] : memref<8x128xf32, #tpu.memory_space<vmem>>, vector<8x128xf32>
    %c0_2 = arith.constant 0 : index
    %c0_3 = arith.constant 0 : index
    %4 = vector.load %arg3[%c0_2, %c0_3] : memref<8x128xf32, #tpu.memory_space<vmem>>, vector<8x128xf32>
    %5 = arith.subf %3, %4 : vector<8x128xf32>
    %cst = arith.constant 5.000000e-01 : f32
    %6 = vector.broadcast %cst : f32 to vector<8x128xf32>
    %7 = arith.mulf %6, %5 : vector<8x128xf32>
    %8 = math.tanh %7 : vector<8x128xf32>
    %9 = arith.mulf %5, %8 : vector<8x128xf32>
    %c1_i32 = arith.constant 1 : i32
    %10 = arith.muli %arg0, %c1_i32 : i32
    %11 = arith.addi %10, %arg1 : i32
    %c1024_i32 = arith.constant 1024 : i32
    %12 = arith.muli %11, %c1024_i32 : i32
    %c2048_i32 = arith.constant 2048 : i32
    %13 = arith.subi %c2048_i32, %12 : i32
    %c1024_i32_4 = arith.constant 1024 : i32
    %14 = arith.cmpi sge, %13, %c1024_i32_4 : i32
    %15 = arith.extui %14 : i1 to i32
    %c0_i32_5 = arith.constant 0 : i32
    %16 = arith.cmpi ne, %15, %c0_i32_5 : i32
    scf.if %16 {
      %c0_8 = arith.constant 0 : index
      %c0_9 = arith.constant 0 : index
      %20 = vector.load %arg4[%c0_8, %c0_9] : memref<8x128xf32, #tpu.memory_space<vmem>>, vector<8x128xf32>
      %21 = vector.shape_cast %9 : vector<8x128xf32> to vector<1x8x128xf32>
      %cst_10 = arith.constant dense<0.000000e+00> : vector<8x128xf32>
      %22 = vector.multi_reduction <add>, %21, %cst_10 [0] : vector<1x8x128xf32> to vector<8x128xf32>
      %23 = arith.addf %20, %22 : vector<8x128xf32>
      %c0_11 = arith.constant 0 : index
      %c0_12 = arith.constant 0 : index
      %24 = vector.load %arg4[%c0_11, %c0_12] : memref<8x128xf32, #tpu.memory_space<vmem>>, vector<8x128xf32>
      tpu.vector_store %arg4[%c0_11, %c0_12], %23 {strides = array<i32>} : memref<8x128xf32, #tpu.memory_space<vmem>>, vector<8x128xf32>,
    } else {
    }
    %c1024_i32_6 = arith.constant 1024 : i32
    %17 = arith.cmpi slt, %13, %c1024_i32_6 : i32
    %18 = arith.extui %17 : i1 to i32
    %c0_i32_7 = arith.constant 0 : i32
    %19 = arith.cmpi ne, %18, %c0_i32_7 : i32
    scf.if %19 {
      %20 = tpu.iota {dimensions = array<i32: 0>} : vector<8x128xi32>
      %c128_i32 = arith.constant 128 : i32
      %21 = vector.broadcast %c128_i32 : i32 to vector<8x128xi32>
      %22 = arith.muli %20, %21 : vector<8x128xi32>
      %23 = tpu.iota {dimensions = array<i32: 1>} : vector<8x128xi32>
      %24 = arith.addi %22, %23 : vector<8x128xi32>
      %c0_8 = arith.constant 0 : index
      %c0_9 = arith.constant 0 : index
      %25 = vector.load %arg4[%c0_8, %c0_9] : memref<8x128xf32, #tpu.memory_space<vmem>>, vector<8x128xf32>
      %26 = vector.broadcast %13 : i32 to vector<8x128xi32>
      %27 = arith.cmpi slt, %24, %26 : vector<8x128xi32>
      %cst_10 = arith.constant 0.000000e+00 : f32
      %28 = vector.broadcast %cst_10 : f32 to vector<8x128xf32>
      %29 = arith.select %27, %9, %28 : vector<8x128xi1>, vector<8x128xf32>
      %30 = vector.shape_cast %29 : vector<8x128xf32> to vector<1x8x128xf32>
      %cst_11 = arith.constant dense<0.000000e+00> : vector<8x128xf32>
      %31 = vector.multi_reduction <add>, %30, %cst_11 [0] : vector<1x8x128xf32> to vector<8x128xf32>
      %32 = arith.addf %25, %31 : vector<8x128xf32>
      %c0_12 = arith.constant 0 : index
      %c0_13 = arith.constant 0 : index
      %33 = vector.load %arg4[%c0_12, %c0_13] : memref<8x128xf32, #tpu.memory_space<vmem>>, vector<8x128xf32>
      tpu.vector_store %arg4[%c0_12, %c0_13], %32 {strides = array<i32>} : memref<8x128xf32, #tpu.memory_space<vmem>>, vector<8x128xf32>,
    } else {
    }
    return
  }
  func.func @transform_0(%arg0: i32, %arg1: i32) -> (i32, i32) {
    %c1_i32 = arith.constant 1 : i32
    %0 = arith.muli %arg0, %c1_i32 : i32
    %1 = arith.addi %0, %arg1 : i32
    %c1_i32_0 = arith.constant 1 : i32
    %2 = arith.minsi %1, %c1_i32_0 : i32
    %c0_i32 = arith.constant 0 : i32
    %c0_i32_1 = arith.constant 0 : i32
    return %2, %c0_i32 : i32, i32
  }
  func.func @transform_1(%arg0: i32, %arg1: i32) -> (i32, i32) {
    %c1_i32 = arith.constant 1 : i32
    %0 = arith.muli %arg0, %c1_i32 : i32
    %1 = arith.addi %0, %arg1 : i32
    %c1_i32_0 = arith.constant 1 : i32
    %2 = arith.minsi %1, %c1_i32_0 : i32
    %c0_i32 = arith.constant 0 : i32
    %c0_i32_1 = arith.constant 0 : i32
    return %2, %c0_i32 : i32, i32
  }
  func.func @transform_2(%arg0: i32, %arg1: i32) -> (i32, i32) {
    %c0_i32 = arith.constant 0 : i32
    %c0_i32_0 = arith.constant 0 : i32
    return %arg0, %c0_i32 : i32, i32
  }
}

</mosaic_0001>

<bundles_post_ra>
// kernel: tpu_custom_call.1
= control target key start
LH: loop header
LB: loop body
LE: loop exit
PB: predicated region body
PF: predicated region fallthrough
CT: control target
= control target key end

     0   :  { %s865_s0 = inlined_call_operand.hbm [shape: f32[16,128], index: 0, kind: input, shape index: {}]   ;;  %s866_s1 = inlined_call_operand.hbm [shape: f32[16,128], index: 1, kind: input, shape index: {}]   ;;  %s867_s2 = inlined_call_operand.hbm [shape: f32[16,128], index: 2, kind: output, shape index: {}]  }
   0x1   :  { %870 = sst [smem:[#allocation13_spill]] %s865_s0 }
   0x2   :  { %7 = vsyncpa [#allocation3], 0 }
   0x3   :  { %9 = vsyncpa [#allocation3 + $0x1], 0 }
   0x4   :  { %10 = vsyncpa [#allocation6], 0 }
   0x5   :  { %12 = vsyncpa [#allocation6 + $0x1], 0 }
   0x6   :  { %13 = vsyncpa [#allocation4], 0 }
   0x7   :  { %15 = vsyncpa [#allocation4 + $0x1], 0  ;;  %s693_s9 = smov 0   ;;  %s695_s10 = smov 0  }
   0x8   :  { %s697_s11 = smov 0   ;;  %s699_s12 = smov 0  }
   0x9   :  { %s701_s13 = smov 0   ;;  %s703_s14 = smov 0  }
   0xa   :  { %s705_s15 = smov 0   ;;  %s707_s16 = smov 0  }
   0xb   :  { %s709_s17 = smov 0  }
   0xc LB: > { %871 = sst [smem:[#allocation11_spill]] %s671_s16  ;;  %s392_s18 = sadd.s32 4294967295, %s675_s17   ;;  %s675_s17 = sphi %s709_s17, %s21_s17   ;;  %s671_s16 = sphi %s707_s16, %s879_s16   ;;  %s667_s15 = sphi %s705_s15, %s878_s15   ;;  %s663_s14 = sphi %s703_s14, %s885_s14   ;;  %s659_s13 = sphi %s701_s13, %s884_s13   ;;  %s655_s12 = sphi %s699_s12, %s883_s12   ;;  %s651_s11 = sphi %s697_s11, %s882_s11   ;;  %s647_s10 = sphi %s695_s10, %s881_s10   ;;  %s643_s9 = sphi %s693_s9, %s880_s9  }
   0xd   : > { %s393_s19 = sadd.s32 4294967294, %s675_s17   ;;  %s33_s20 = sadd.s32 1, %s671_s16 }
   0xe   : > { %p38_p0 = scmp.lt.s32.totalorder %s671_s16, 1  ;;  %p35_p1 = scmp.ge.s32.totalorder %s33_s20, 2 }
   0xf   : > { %s46_s21 = sadd.s32 1, %s663_s14  ;;  %p53_p2 = scmp.ne.s32.totalorder %s663_s14, %s659_s13 }
  0x10   : > { %s742_s22 = scalar_select %p38_p0, %s671_s16, 1 }
  0x11   : > { %s887_s20 = smov (%p35_p1, %s33_s20), 0  ;;  %p54_p3 = scmp.eq.s32.totalorder %s675_s17, 0 }
  0x12   : > { %872 = sst [smem:[#allocation12_spill]] %s887_s20  ;;  %p41_p4 = scmp.lt.s32.totalorder %s887_s20, 1 }
  0x13   : > { %p59_p5 = scmp.ne.s32.totalorder %s659_s13, %s655_s12  ;;  %p751_p6 = por %p54_p3, %p53_p2 }
  0x14   : > { %p60_p7 = scmp.eq.s32.totalorder %s392_s18, 0  ;;  %s101_s26 = ssub.s32 %s671_s16, %s887_s20 }
  0x15   : > { %s42_s24 = scalar_select %p41_p4, %s887_s20, 1 }
  0x16   : > { %p756_p8 = por %p60_p7, %p59_p5  ;;  %p102_p9 = scmp.eq.s32.totalorder %s101_s26, 0 }
  0x17   : > { %s43_s27 = ssub.s32 %s742_s22, %s42_s24  ;;  %s104_s28 = sadd.s32 1, %s651_s11 }
  0x18   : > { %p44_p10 = scmp.eq.s32.totalorder %s43_s27, 0  ;;  %p114_p11 = scmp.ne.s32.totalorder %s651_s11, %s647_s10 }
  0x19   : > { %s765_s29 = scalar_select %p102_p9, %s651_s11, %s104_s28  }
  0x1a   : > { %s768_s30 = scalar_select %p44_p10, %s663_s14, %s46_s21  }
  0x1b   : > { %p115_p12 = scmp.eq.s32.totalorder %s392_s18, 1  ;;  %p120_p13 = scmp.ne.s32.totalorder %s647_s10, %s643_s9 }
  0x1c   : > { %p121_p0 = scmp.eq.s32.totalorder %s393_s19, 1  ;;  %p395_p2 = scmp.ge.s32.totalorder %s675_s17, 2 }
  0x1d   : > { %p774_p1 = por %p115_p12, %p114_p11  ;;  %p428_p4 = scmp.lt.s32.totalorder %s675_s17, 2 }
  0x1e   : > { %p779_p3 = por %p121_p0, %p120_p13  ;;  %s141_s5 = sand.u32 1, %s663_s14  }
  0x1f   : > { %s397_s6 = sshll.u32 %s742_s22, 3  ;;  %s396_s7 = sshll.u32 %s141_s5, 3 }
  0x20   : > { %s877_s0 = sld [smem:[#allocation13_spill]]  ;;  %s145_s19 = scalar_lea.vmem [#allocation2], %s396_s7 }
  0x21   : > { %s156_s24 = sshll.u32 %s145_s19, 4  ;;  %p418_p5 = pnand %p428_p4, %p751_p6  ;;  %s157_s24 = int_to_ptr.vmem [resolvable:$true] %s156_s24 }
  0x22   : > { %p400_p7 = scmp.ge.s32.totalorder %s675_s17, 1  ;;  %p183_p9 = scmp.lt.s32.totalorder %s675_s17, 3 }
  0x23   : > { %s142_s26 = scalar_lea.sflag [#allocation3], %s141_s5  ;;  %s174_s22 = scalar_lea.hbm %s866_s1, %s397_s6 }
  0x24   : > { %p184_p10 = pnand %p400_p7, %p183_p9  ;;  %s176_s20 = sshll.u32 %s174_s22, 4  ;;  %s177_s20 = int_to_ptr.hbm [resolvable:$true] %s176_s20 }
  0x25   : > { %s167_s16 = scalar_lea.vmem [#allocation5], %s396_s7  ;;  %s164_s12 = scalar_lea.sflag [#allocation6], %s141_s5 }
  0x26   : > { %s152_s18 = scalar_lea.hbm %s877_s0, %s397_s6  ;;  %s178_s8 = sshll.u32 %s167_s16, 4  ;;  %s179_s8 = int_to_ptr.vmem [resolvable:$true] %s178_s8 }
  0x27   : > { %s154_s21 = sshll.u32 %s152_s18, 4  ;;  %187 = sbr.rel (%p184_p10) target bundleno = 100 (0x64), region = 28  ;;  %s155_s21 = int_to_ptr.hbm [resolvable:$true] %s154_s21 }
  0x28   : > { %420 = dma.hbm_to_vmem [thread:$0]  (!%p418_p5), %s155_s21, 128, %s157_s24, %s142_s26  }
  0x29   : > { %423 = dma.hbm_to_vmem [thread:$0]  (!%p418_p5), %s177_s20, 128, %s179_s8, %s164_s12  }
  0x2a   : > { %s189_s23 = sand.u32 (!%p184_p10), 1, %s659_s13  }
  0x2b   : > { %s401_s18 = sshll.u32 (!%p184_p10), %s189_s23, 3  ;;  %s190_s19 = scalar_lea.sflag (!%p184_p10), [#allocation3], %s189_s23 }
  0x2c   : > { %s193_s0 = scalar_lea.vmem [#allocation2], %s401_s18 }
  0x2d   : > { %630 = dma.done.wait (%p756_p8), %s190_s19, 128  }
  0x2e   : > { %632 = vsyncadd (%p756_p8), %s190_s19, 4294967168  ;;  %s200_s6 = scalar_lea.sflag [#allocation6], %s189_s23  ;;  %s203_s7 = scalar_lea.vmem [#allocation5], %s401_s18 }
  0x2f   : > { %634 = dma.done.wait (%p756_p8), %s200_s6, 128  }
  0x30   : > { %636 = vsyncadd (%p756_p8), %s200_s6, 4294967168  ;;  %s227_s16 = sand.u32 1, %s647_s10   ;;  %s404_s20 = sshll.u32 %s667_s15, 10  ;;  %v677_v0 = vmov 0.0   ;;  %v241_v1 = vld [vmem:[%s193_s0] sm:$0xff]  ;;  %v242_v2 = vld [vmem:[%s203_s7] sm:$0xff] }
  0x31   : > { %s403_s5 = sshll.u32 %s227_s16, 3  ;;  %s249_s21 = ssub.s32 2048, %s404_s20  ;;  %v243_v3 = vsub.f32 %v241_v1, %v242_v2 }
  0x32   : > { %s809_s24 = scalar_lea.vmem [#allocation7], %s403_s5  ;;  %p405_p6 = scmp.lt.s32.totalorder %s249_s21, 1024 }
  0x33   : > { %240 = vst [vmem:[%s809_s24] sm:$0xff] %v677_v0  ;;  %v244_v4 = vmul.f32 0.5, %v243_v3 }
  0x35   : > { %503 = vtanh.f32 %v244_v4 }
  0x38   : > { %253 = sbr.rel (%p405_p6) target bundleno = 65 (0x41), region = 44 }
  0x3b   : > { %v504_v5 = vpop.eup %503 }
  0x3c   : > { %v246_v6 = vmul.f32 %v504_v5, %v243_v3 }
  0x3d   : > { %v254_v7 = vld [vmem:[%s809_s24] sm:$0xff] }
  0x3e   : > { %v256_v8 = vadd.f32 %v254_v7, %v246_v6 }
  0x40   : > { %257 = vst [vmem:[%s809_s24] sm:$0xff] %v256_v8 }
  0x41 PF: > { %p406_p8 = scmp.ge.s32.totalorder %s249_s21, 1024 }
  0x43   : > { %261 = sbr.rel (%p406_p8) target bundleno = 85 (0x55), region = 48 }
  0x48   : > { %v262_v9 = vlaneseq  ;;  %v269_v13 = vstv %s249_s21  ;;  %v268_v15 = vld [vmem:[%s809_s24] sm:$0xff] }
  0x4a   : > { %v263_v10 = vshrl.u32 %v262_v9, 7  ;;  %v266_v11 = vand.u32 127, %v262_v9 }
  0x4c   : > { %v264_v12 = vmul.u32 128, %v263_v10 }
  0x4e   : > { %v267_v14 = vadd.s32 %v266_v11, %v264_v12 }
  0x50   : > { %vm270_vm0 = vcmp.lt.s32.totalorder %v267_v14, %v269_v13 }
  0x51   : > { %v271_v16 = vsel %vm270_vm0, %v246_v6, 0.0 }
  0x52   : > { %v273_v17 = vadd.f32 %v271_v16, %v268_v15 }
  0x54   : > { %274 = vst [vmem:[%s809_s24] sm:$0xff] %v273_v17 }
  0x55 PF: > { %s408_s0 = sshll.u32 %s667_s15, 3  ;;  %s288_s28 = sshll.u32 %s809_s24, 4  ;;  %s289_s28 = int_to_ptr.vmem [resolvable:$true] %s288_s28 }
  0x56   : > { %s286_s27 = scalar_lea.hbm %s867_s2, %s408_s0  ;;  %s276_s8 = scalar_lea.sflag [#allocation4], %s227_s16 }
  0x57   : > { %s290_s22 = sshll.u32 %s286_s27, 4  ;;  %s585_s15 = scalar_lea.hbm %s867_s2, 16  ;;  %s291_s22 = int_to_ptr.hbm [resolvable:$true] %s290_s22 }
  0x58   : > { %s579_s12 = sshra.s32 %s291_s22, 4  ;;  %s580_s12 = int_to_ptr.hbm [resolvable:$true] %s579_s12 }
  0x59   : > { %s581_s23 = scalar_lea.hbm %s580_s12, 8  ;;  %p586_p0 = scmp.lt.s32.totalorder %s580_s12, %s867_s2 }
  0x5a   : > { %p582_p11 = scmp.ne.s32.totalorder %s580_s12, %s581_s23  ;;  %p587_p4 = scmp.lt.s32.totalorder %s585_s15, %s581_s23 }
  0x5c   : > { %p583_p12 = pnand %p582_p11, %p774_p1  ;;  %p588_p5 = por %p587_p4, %p586_p0 }
  0x5e   : > { %p584_p13 = pneg %p583_p12 }
  0x60   : > { %p589_p7 = pnand %p588_p5, %p584_p13 }
  0x62   : > { %592 = shalt.err (!%p589_p7)
}
  0x63   : > { %415 = dma.vmem_to_hbm [thread:$0]  (%p774_p1), %s289_s28, 128, %s291_s22, %s276_s8  }
  0x64 PF: > { %s302_s16 = sand.u32 1, %s643_s9   ;;  %p425_p9 = pnand %p395_p2, %p779_p3 }
  0x65   : > { %s303_s20 = scalar_lea.sflag [#allocation4], %s302_s16 }
  0x66   : > { %p426_p10 = pneg %p425_p9 }
  0x68   : > { %638 = dma.done.wait (%p426_p10), %s303_s20, 128  }
  0x69   : > { %640 = vsyncadd (%p426_p10), %s303_s20, 4294967168  ;;  %s21_s17 = sadd.s32 1, %s675_s17   ;;  %s878_s15 = sld [smem:[#allocation11_spill]] }
  0x6a   : > { %p18_p6 = scmp.ge.s32.totalorder %s21_s17, 4   ;;  %s879_s16 = sld [smem:[#allocation12_spill]] }
  0x6b   : > { %s880_s9 = smov %s647_s10  ;;  %s881_s10 = smov %s651_s11 }
  0x6c   : > { %s882_s11 = smov %s765_s29  ;;  %s883_s12 = smov %s659_s13 }
  0x6d   : > { %s884_s13 = smov %s663_s14  ;;  %s885_s14 = smov %s768_s30 }
  0x6e   :  { %20 = sbr.rel (!%p18_p6) target bundleno = 12 (0xc), region = 98 }
  0x73   :  { %309 = vsyncpa [#allocation3], 1 }
  0x74   :  { %311 = vsyncpa [#allocation3 + $0x1], 1 }
  0x75   :  { %312 = vsyncpa [#allocation6], 1 }
  0x76   :  { %314 = vsyncpa [#allocation6 + $0x1], 1 }
  0x77   :  { %315 = vsyncpa [#allocation4], 1 }
  0x78   :  { %317 = vsyncpa [#allocation4 + $0x1], 1 }

</bundles_post_ra>
